<compile_context>
chip_gen: v6e
topology: v6e:2x2x1
jax: 0.10.0
libtpu: 0.0.40
codegen_flags: <defaults>
</compile_context>

<pallas_src>
import jax
import jax.numpy as jnp
from jax.experimental import pallas as pl
from jax.experimental.pallas import tpu as pltpu


NUM_CORES = 4          # one Core per row of the EIC layer
IN_FEATURES = 256      # per-core input features (4 cols x 64)
OUT_FEATURES = 64      # per-core output features
X_FLAT = NUM_CORES * IN_FEATURES    # 1024
Y_FLAT = NUM_CORES * OUT_FEATURES   # 256


def _round_up(a, m):
    return ((a + m - 1) // m) * m


def _core_kernel(x_ref, w_ref, o_ref):
    # x_ref: (TB, 1024) f32   w_ref: (1024, 256) bf16   o_ref: (TB, 256) f32
    x = x_ref[...].astype(jnp.bfloat16)          # VPU cast; HBM traffic stays f32
    # Block-diagonal matmul: column block r of y is core r's (TB, 64) output.
    y = jnp.dot(x, w_ref[...], preferred_element_type=jnp.float32)   # (TB, 256)

    # Per-core epilogue on static 64-lane slices; one concatenate at the end
    # keeps the store full lane width (lane-dense output).
    parts = []
    for r in range(NUM_CORES):
        yr = y[:, r * OUT_FEATURES:(r + 1) * OUT_FEATURES]            # (TB, 64)
        m = jnp.max(yr, axis=1, keepdims=True)                        # (TB, 1)
        parts.append(jax.nn.sigmoid(yr - 0.5 * m))
    o_ref[...] = jnp.concatenate(parts, axis=1).astype(o_ref.dtype)


def pack_core_weights(weights, dtype=jnp.bfloat16):
    """Pack per-core weights (4, 256, 64) into one block-diagonal (1024, 256).

    Call ONCE at weight-load time (hoisted out of the per-forward path)."""
    assert weights.shape == (NUM_CORES, IN_FEATURES, OUT_FEATURES), weights.shape
    w_bd = jnp.zeros((X_FLAT, Y_FLAT), dtype=jnp.float32)
    for r in range(NUM_CORES):
        w_bd = w_bd.at[r * IN_FEATURES:(r + 1) * IN_FEATURES,
                       r * OUT_FEATURES:(r + 1) * OUT_FEATURES].set(
                           weights[r].astype(jnp.float32))
    return w_bd.astype(dtype)


def eic_layer4(x, w_bd, *, tb_max=1024):
    """x: (B, 4, 4, 64) f32; w_bd: (1024, 256) packed weights (pack_core_weights).

    Returns (B, 4, 1, 64) f32, matching Core.forward applied per row."""
    B = x.shape[0]
    assert x.shape[1:] == (NUM_CORES, 4, OUT_FEATURES), x.shape
    assert w_bd.shape == (X_FLAT, Y_FLAT), w_bd.shape

    # Pure reshape (free): row r occupies columns [256r, 256(r+1)); within it
    # col c sits at [64c, 64(c+1)) — exactly torch.cat over the 4 cols.
    x_flat = x.reshape(B, X_FLAT)

    # Batch tiling: single full-array block for small B; otherwise >=2 tiles
    # (multiple of 256 rows) so the "parallel" grid can shard across both v7x
    # TensorCores, with a ragged final block (no padding / slicing copies).
    if B <= 256:
        tb = B
    else:
        tb = min(tb_max, _round_up(pl.cdiv(B, 2), 256))
    n_tiles = pl.cdiv(B, tb)

    out = pl.pallas_call(
        _core_kernel,
        out_shape=jax.ShapeDtypeStruct((B, Y_FLAT), jnp.float32),
        grid=(n_tiles,),
        in_specs=[
            pl.BlockSpec((tb, X_FLAT), lambda i: (i, 0)),
            pl.BlockSpec((X_FLAT, Y_FLAT), lambda i: (0, 0)),   # resident weights
        ],
        out_specs=pl.BlockSpec((tb, Y_FLAT), lambda i: (i, 0)),
        compiler_params=pltpu.CompilerParams(
            dimension_semantics=("parallel",),
            vmem_limit_bytes=32 * 1024 * 1024),
    )(x_flat, w_bd)

    # Lane-dense (B, 256) -> (B, 4, 1, 64): pure reshape, no transpose.
    return out.reshape(B, NUM_CORES, OUT_FEATURES)[:, :, None, :]


def eic_layer4_ref(x, weights):
    """Pure-JAX reference of the PyTorch forward (for verification)."""
    B = x.shape[0]
    chunks = x.reshape(B, NUM_CORES, IN_FEATURES)           # (B, row, 256)
    y = jnp.einsum("brk,rkn->brn", chunks, weights)         # (B, 4, 64)
    m = jnp.max(y, axis=-1, keepdims=True)
    y = jax.nn.sigmoid(y - 0.5 * m)
    return y[:, :, None, :]


if __name__ == "__main__":
    key = jax.random.PRNGKey(0)
    kx, kw, kx2 = jax.random.split(key, 3)

    # Deterministic per-core weights.  Torch Linear weight is (out=64, in=256);
    # we store the transpose (256, 64) per core, stacked over the 4 cores.
    bound = 1.0 / jnp.sqrt(float(IN_FEATURES))   # nn.Linear default uniform bound
    weights = jax.random.uniform(
        kw, (NUM_CORES, IN_FEATURES, OUT_FEATURES), dtype=jnp.float32,
        minval=-bound, maxval=bound)
    w_bd = pack_core_weights(weights)            # packed once, reused per call

    # Small batch (single full-array block path).
    x_small = jax.random.uniform(kx, (2, NUM_CORES, 4, OUT_FEATURES),
                                 dtype=jnp.float32)
    out_small = jax.block_until_ready(eic_layer4(x_small, w_bd))
    ref_small = eic_layer4_ref(x_small, weights)
    assert out_small.shape == (2, NUM_CORES, 1, OUT_FEATURES), out_small.shape
    assert jnp.allclose(out_small, ref_small, atol=1e-2, rtol=1e-2)

    # Moderate batch (2-tile parallel grid + ragged final block, no padding).
    x_big = jax.random.uniform(kx2, (300, NUM_CORES, 4, OUT_FEATURES),
                               dtype=jnp.float32)
    out_big = jax.block_until_ready(eic_layer4(x_big, w_bd))
    ref_big = eic_layer4_ref(x_big, weights)
    assert out_big.shape == (300, NUM_CORES, 1, OUT_FEATURES), out_big.shape
    assert jnp.allclose(out_big, ref_big, atol=1e-2, rtol=1e-2)

    print("KERNEL_OK")
</pallas_src>

<mosaic_0001>
module attributes {stable_mosaic.version = 11 : i64} {
  func.func @_core_kernel(%arg0: i32, %arg1: memref<2x1024xf32, #tpu.memory_space<vmem>>, %arg2: memref<1024x256xbf16, #tpu.memory_space<vmem>>, %arg3: memref<2x256xf32, #tpu.memory_space<vmem>>) attributes {dimension_semantics = [#tpu.dimension_semantics<parallel>], iteration_bounds = array<i64: 1>, scalar_prefetch = 0 : i64, scratch_operands = 0 : i64, tpu.core_type = #tpu.core_type<tc>, window_params = [{transform_indices = @transform_0, window_bounds = array<i64: 2, 1024>}, {pipeline_mode = #tpu.pipeline_mode<synchronous>, transform_indices = @transform_1, window_bounds = array<i64: 1024, 256>}, {transform_indices = @transform_2, window_bounds = array<i64: 2, 256>}]} {
    %c0 = arith.constant 0 : index
    %c0_0 = arith.constant 0 : index
    %0 = vector.load %arg1[%c0, %c0_0] : memref<2x1024xf32, #tpu.memory_space<vmem>>, vector<2x1024xf32>
    %1 = arith.truncf %0 : vector<2x1024xf32> to vector<2x1024xbf16>
    %c0_1 = arith.constant 0 : index
    %c0_2 = arith.constant 0 : index
    %2 = vector.load %arg2[%c0_1, %c0_2] : memref<1024x256xbf16, #tpu.memory_space<vmem>>, vector<1024x256xbf16>
    %cst = arith.constant dense<0.000000e+00> : vector<2x256xf32>
    %3 = tpu.matmul %1, %2, %cst {dimension_numbers = #tpu.dot_dimension_numbers<[1], [0], [0], [1], [0, 0, 1, 1], [], []>} : vector<2x1024xbf16>, vector<1024x256xbf16>, vector<2x256xf32> -> vector<2x256xf32>
    %4 = vector.extract_strided_slice %3 {offsets = [0, 0], sizes = [2, 64], strides = [1, 1]} : vector<2x256xf32> to vector<2x64xf32>
    %cst_3 = arith.constant dense<0xFF800000> : vector<2xf32>
    %5 = vector.multi_reduction <maximumf>, %4, %cst_3 [1] : vector<2x64xf32> to vector<2xf32>
    %6 = vector.shape_cast %5 : vector<2xf32> to vector<2x1xf32>
    %cst_4 = arith.constant 5.000000e-01 : f32
    %7 = vector.broadcast %cst_4 : f32 to vector<2x1xf32>
    %8 = arith.mulf %7, %6 : vector<2x1xf32>
    %9 = vector.broadcast %8 : vector<2x1xf32> to vector<2x64xf32>
    %10 = arith.subf %4, %9 : vector<2x64xf32>
    %11 = arith.negf %10 : vector<2x64xf32>
    %12 = math.exp %11 : vector<2x64xf32>
    %cst_5 = arith.constant 1.000000e+00 : f32
    %13 = vector.broadcast %cst_5 : f32 to vector<2x64xf32>
    %14 = arith.addf %13, %12 : vector<2x64xf32>
    %15 = arith.divf %13, %14 : vector<2x64xf32>
    %16 = vector.extract_strided_slice %3 {offsets = [0, 64], sizes = [2, 64], strides = [1, 1]} : vector<2x256xf32> to vector<2x64xf32>
    %cst_6 = arith.constant dense<0xFF800000> : vector<2xf32>
    %17 = vector.multi_reduction <maximumf>, %16, %cst_6 [1] : vector<2x64xf32> to vector<2xf32>
    %18 = vector.shape_cast %17 : vector<2xf32> to vector<2x1xf32>
    %cst_7 = arith.constant 5.000000e-01 : f32
    %19 = vector.broadcast %cst_7 : f32 to vector<2x1xf32>
    %20 = arith.mulf %19, %18 : vector<2x1xf32>
    %21 = vector.broadcast %20 : vector<2x1xf32> to vector<2x64xf32>
    %22 = arith.subf %16, %21 : vector<2x64xf32>
    %23 = arith.negf %22 : vector<2x64xf32>
    %24 = math.exp %23 : vector<2x64xf32>
    %cst_8 = arith.constant 1.000000e+00 : f32
    %25 = vector.broadcast %cst_8 : f32 to vector<2x64xf32>
    %26 = arith.addf %25, %24 : vector<2x64xf32>
    %27 = arith.divf %25, %26 : vector<2x64xf32>
    %28 = vector.extract_strided_slice %3 {offsets = [0, 128], sizes = [2, 64], strides = [1, 1]} : vector<2x256xf32> to vector<2x64xf32>
    %cst_9 = arith.constant dense<0xFF800000> : vector<2xf32>
    %29 = vector.multi_reduction <maximumf>, %28, %cst_9 [1] : vector<2x64xf32> to vector<2xf32>
    %30 = vector.shape_cast %29 : vector<2xf32> to vector<2x1xf32>
    %cst_10 = arith.constant 5.000000e-01 : f32
    %31 = vector.broadcast %cst_10 : f32 to vector<2x1xf32>
    %32 = arith.mulf %31, %30 : vector<2x1xf32>
    %33 = vector.broadcast %32 : vector<2x1xf32> to vector<2x64xf32>
    %34 = arith.subf %28, %33 : vector<2x64xf32>
    %35 = arith.negf %34 : vector<2x64xf32>
    %36 = math.exp %35 : vector<2x64xf32>
    %cst_11 = arith.constant 1.000000e+00 : f32
    %37 = vector.broadcast %cst_11 : f32 to vector<2x64xf32>
    %38 = arith.addf %37, %36 : vector<2x64xf32>
    %39 = arith.divf %37, %38 : vector<2x64xf32>
    %40 = vector.extract_strided_slice %3 {offsets = [0, 192], sizes = [2, 64], strides = [1, 1]} : vector<2x256xf32> to vector<2x64xf32>
    %cst_12 = arith.constant dense<0xFF800000> : vector<2xf32>
    %41 = vector.multi_reduction <maximumf>, %40, %cst_12 [1] : vector<2x64xf32> to vector<2xf32>
    %42 = vector.shape_cast %41 : vector<2xf32> to vector<2x1xf32>
    %cst_13 = arith.constant 5.000000e-01 : f32
    %43 = vector.broadcast %cst_13 : f32 to vector<2x1xf32>
    %44 = arith.mulf %43, %42 : vector<2x1xf32>
    %45 = vector.broadcast %44 : vector<2x1xf32> to vector<2x64xf32>
    %46 = arith.subf %40, %45 : vector<2x64xf32>
    %47 = arith.negf %46 : vector<2x64xf32>
    %48 = math.exp %47 : vector<2x64xf32>
    %cst_14 = arith.constant 1.000000e+00 : f32
    %49 = vector.broadcast %cst_14 : f32 to vector<2x64xf32>
    %50 = arith.addf %49, %48 : vector<2x64xf32>
    %51 = arith.divf %49, %50 : vector<2x64xf32>
    %52 = tpu.concatenate %15, %27, %39, %51 in 1 : vector<2x64xf32>, vector<2x64xf32>, vector<2x64xf32>, vector<2x64xf32> -> vector<2x256xf32>
    %c0_15 = arith.constant 0 : index
    %c0_16 = arith.constant 0 : index
    %53 = vector.load %arg3[%c0_15, %c0_16] : memref<2x256xf32, #tpu.memory_space<vmem>>, vector<2x256xf32>
    tpu.vector_store %arg3[%c0_15, %c0_16], %52 {strides = array<i32>} : memref<2x256xf32, #tpu.memory_space<vmem>>, vector<2x256xf32>,
    return
  }
  func.func @transform_0(%arg0: i32) -> (i32, i32) {
    %c0_i32 = arith.constant 0 : i32
    %c0_i32_0 = arith.constant 0 : i32
    return %arg0, %c0_i32 : i32, i32
  }
  func.func @transform_1(%arg0: i32) -> (i32, i32) {
    %c0_i32 = arith.constant 0 : i32
    %c0_i32_0 = arith.constant 0 : i32
    %c0_i32_1 = arith.constant 0 : i32
    return %c0_i32, %c0_i32_0 : i32, i32
  }
  func.func @transform_2(%arg0: i32) -> (i32, i32) {
    %c0_i32 = arith.constant 0 : i32
    %c0_i32_0 = arith.constant 0 : i32
    return %arg0, %c0_i32 : i32, i32
  }
}

</mosaic_0001>

<bundles_post_ra>
// kernel: tpu_custom_call.1
= control target key start
LH: loop header
LB: loop body
LE: loop exit
PB: predicated region body
PF: predicated region fallthrough
CT: control target
= control target key end

     0   :  { %7 = vsyncpa [#allocation3], 0  ;;  %s1564_s0 = inlined_call_operand.hbm [shape: f32[2,1024], index: 0, kind: input, shape index: {}]   ;;  %s1565_s1 = inlined_call_operand.hbm [shape: bf16[1024,256], index: 1, kind: input, shape index: {}]   ;;  %s1566_s2 = inlined_call_operand.hbm [shape: f32[2,256], index: 2, kind: output, shape index: {}]  }
   0x1   :  { %8 = vsyncpa [#allocation6], 0 }
   0x2   :  { %9 = vsyncpa [#allocation4], 0  ;;  %s1516_s9 = smov [#allocation2]   ;;  %s1517_s11 = smov [#allocation5]  }
   0x3   :  { %s16_s10 = sshll.u32 %s1516_s9, 4  ;;  %s25_s12 = sshll.u32 %s1517_s11, 4  ;;  %s17_s10 = int_to_ptr.vmem [resolvable:$true] %s16_s10  ;;  %s26_s12 = int_to_ptr.vmem [resolvable:$true] %s25_s12 }
   0x4   :  { %s1458_s13 = scalar_lea.vmem %s17_s10, 256  ;;  %p1463_p1 = scmp.lt.s32.totalorder %s17_s10, %s17_s10 }
   0x5   :  { %p1459_p0 = scmp.ne.s32.totalorder %s17_s10, %s1458_s13  ;;  %p1464_p2 = scmp.lt.s32.totalorder %s1458_s13, %s1458_s13 }
   0x7   :  { %p1465_p3 = por %p1464_p2, %p1463_p1 }
   0x9   :  { %p1466_p4 = pnand %p1465_p3, %p1459_p0 }
   0xb   :  { %1469 = shalt.err (!%p1466_p4)
}
   0xc   :  { %19 = dma.hbm_to_vmem [thread:$0]  %s1564_s0, 256, %s17_s10, [#allocation3]  }
   0xd   :  { %s1478_s16 = scalar_lea.vmem %s26_s12, 16384  ;;  %p1483_p6 = scmp.lt.s32.totalorder %s26_s12, %s26_s12 }
   0xe   :  { %p1479_p5 = scmp.ne.s32.totalorder %s26_s12, %s1478_s16  ;;  %p1484_p7 = scmp.lt.s32.totalorder %s1478_s16, %s1478_s16 }
  0x10   :  { %p1485_p8 = por %p1484_p7, %p1483_p6 }
  0x12   :  { %p1486_p9 = pnand %p1485_p8, %p1479_p5 }
  0x14   :  { %1489 = shalt.err (!%p1486_p9)
}
  0x15   :  { %s1518_s17 = smov 128   ;;  %s1519_s18 = smov 8  }
  0x16   :  { %31 = dma.hbm_to_vmem [thread:$0]  %s1565_s1, 16384, %s26_s12, [#allocation6], %s1518_s17, %s1518_s17, %s1519_s18  }
  0x17   :  { %1510 = dma.done.wait [#allocation3], 256  }
  0x18   :  { %1511 = vsyncadd [#allocation3], 4294967040 }
  0x19   :  { %1512 = dma.done.wait [#allocation6], 16384  }
  0x1a   :  { %1513 = vsyncadd [#allocation6], 4294950912  ;;  %v1240_v0 = vld [vmem:[#allocation5 + $0x74] ss:$8 sps:$4 sm:$0xff]   ;;  %v1244_v2 = vld [vmem:[#allocation5 + $0x70] ss:$8 sps:$4 sm:$0xff]   ;;  %v46_v38 = vlaneseq }
  0x1b   :  { %v1242_v1 = vld [vmem:[#allocation5 + $0x174] ss:$8 sps:$4 sm:$0xff]   ;;  %860 = vmatprep.subr.bf16.mxu0 %v1240_v0  ;;  %v1245_v3 = vld [vmem:[#allocation5 + $0x170] ss:$8 sps:$4 sm:$0xff]   ;;  %v1246_v4 = vld [vmem:[#allocation5 + $0x64] ss:$8 sps:$4 sm:$0xff]  }
  0x1c   :  { %901 = vmatprep.subr.bf16.mxu1 %v1242_v1  ;;  %861 = vmatpush1.bf16.msra.mxu0 %v1244_v2  ;;  %v1248_v5 = vld [vmem:[#allocation5 + $0x164] ss:$8 sps:$4 sm:$0xff]   ;;  %v1250_v6 = vld [vmem:[#allocation5 + $0x60] ss:$8 sps:$4 sm:$0xff]   ;;  %v1252_v8 = vld [vmem:[#allocation5 + $0x54] ss:$8 sps:$4 sm:$0xff]  }
  0x1d   :  { %902 = vmatpush1.bf16.msra.mxu1 %v1245_v3  ;;  %862 = vmatprep.subr.bf16.mxu0 %v1246_v4  ;;  %v1251_v7 = vld [vmem:[#allocation5 + $0x160] ss:$8 sps:$4 sm:$0xff]   ;;  %v1254_v9 = vld [vmem:[#allocation5 + $0x154] ss:$8 sps:$4 sm:$0xff]   ;;  %v1256_v10 = vld [vmem:[#allocation5 + $0x50] ss:$8 sps:$4 sm:$0xff]  }
  0x1e   :  { %903 = vmatprep.subr.bf16.mxu1 %v1248_v5  ;;  %v1257_v11 = vld [vmem:[#allocation5 + $0x150] ss:$8 sps:$4 sm:$0xff]   ;;  %v1258_v12 = vld [vmem:[#allocation5 + $0x44] ss:$8 sps:$4 sm:$0xff]   ;;  %v1262_v14 = vld [vmem:[#allocation5 + $0x40] ss:$8 sps:$4 sm:$0xff]  }
  0x1f   :  { %v1260_v13 = vld [vmem:[#allocation5 + $0x144] ss:$8 sps:$4 sm:$0xff]   ;;  %v1263_v15 = vld [vmem:[#allocation5 + $0x140] ss:$8 sps:$4 sm:$0xff]   ;;  %v1264_v16 = vld [vmem:[#allocation5 + $0x34] ss:$8 sps:$4 sm:$0xff]  }
  0x20   :  { %863 = vmatpush1.bf16.msra.mxu0 %v1250_v6  ;;  %v1266_v17 = vld [vmem:[#allocation5 + $0x134] ss:$8 sps:$4 sm:$0xff]   ;;  %v1268_v18 = vld [vmem:[#allocation5 + $0x30] ss:$8 sps:$4 sm:$0xff]   ;;  %v1270_v20 = vld [vmem:[#allocation5 + $0x24] ss:$8 sps:$4 sm:$0xff]  }
  0x21   :  { %904 = vmatpush1.bf16.msra.mxu1 %v1251_v7  ;;  %864 = vmatprep.subr.bf16.mxu0 %v1252_v8  ;;  %v1269_v19 = vld [vmem:[#allocation5 + $0x130] ss:$8 sps:$4 sm:$0xff]   ;;  %v1272_v21 = vld [vmem:[#allocation5 + $0x124] ss:$8 sps:$4 sm:$0xff]   ;;  %v1274_v22 = vld [vmem:[#allocation5 + $0x20] ss:$8 sps:$4 sm:$0xff]  }
  0x22   :  { %905 = vmatprep.subr.bf16.mxu1 %v1254_v9  ;;  %v1275_v23 = vld [vmem:[#allocation5 + $0x120] ss:$8 sps:$4 sm:$0xff]   ;;  %v1276_v24 = vld [vmem:[#allocation5 + $0x14] ss:$8 sps:$4 sm:$0xff]   ;;  %v1280_v26 = vld [vmem:[#allocation5 + $0x10] ss:$8 sps:$4 sm:$0xff]  }
  0x23   :  { %v1278_v25 = vld [vmem:[#allocation5 + $0x114] ss:$8 sps:$4 sm:$0xff]   ;;  %v1281_v27 = vld [vmem:[#allocation5 + $0x110] ss:$8 sps:$4 sm:$0xff]   ;;  %v1282_v28 = vld [vmem:[#allocation5 + $0x4] ss:$8 sps:$4 sm:$0xff]  }
  0x24   :  { %865 = vmatpush1.bf16.msra.mxu0 %v1256_v10  ;;  %v1284_v29 = vld [vmem:[#allocation5 + $0x104] ss:$8 sps:$4 sm:$0xff]   ;;  %v1286_v30 = vld [vmem:[#allocation5] ss:$8 sps:$4 sm:$0xff]   ;;  %v1288_v32 = vld [vmem:[#allocation5 + $0xf4] ss:$8 sps:$4 sm:$0xff]  }
  0x25   :  { %906 = vmatpush1.bf16.msra.mxu1 %v1257_v11  ;;  %866 = vmatprep.subr.bf16.mxu0 %v1258_v12  ;;  %v1287_v31 = vld [vmem:[#allocation5 + $0x100] ss:$8 sps:$4 sm:$0xff]   ;;  %v1290_v33 = vld [vmem:[#allocation5 + $0x1f4] ss:$8 sps:$4 sm:$0xff]   ;;  %v1292_v34 = vld [vmem:[#allocation5 + $0xf0] ss:$8 sps:$4 sm:$0xff]  }
  0x26   :  { %907 = vmatprep.subr.bf16.mxu1 %v1260_v13  ;;  %v1293_v35 = vld [vmem:[#allocation5 + $0x1f0] ss:$8 sps:$4 sm:$0xff]   ;;  %v1520_v36 = vmov 1983009808   ;;  %v1294_v39 = vld [vmem:[#allocation5 + $0xe4] ss:$8 sps:$4 sm:$0xff]  }
  0x27   :  { %v44_v37 = vunpack.c.l.s4 %v1520_v36  ;;  %v1296_v40 = vld [vmem:[#allocation5 + $0x1e4] ss:$8 sps:$4 sm:$0xff]   ;;  %v1298_v41 = vld [vmem:[#allocation5 + $0xe0] ss:$8 sps:$4 sm:$0xff]   ;;  %v47_v43 = vshrl.u32 %v46_v38, 7  ;;  %v38_v52 = vld [vmem:[#allocation2] sm:$0xff] }
  0x28   :  { %867 = vmatpush1.bf16.msra.mxu0 %v1262_v14  ;;  %v1299_v44 = vld [vmem:[#allocation5 + $0x1e0] ss:$8 sps:$4 sm:$0xff]   ;;  %v1300_v45 = vld [vmem:[#allocation5 + $0xd4] ss:$8 sps:$4 sm:$0xff]   ;;  %v1304_v47 = vld [vmem:[#allocation5 + $0xd0] ss:$8 sps:$4 sm:$0xff]   ;;  %v42_v55 = vcombine.high %v38_v52, %v38_v52 }
  0x29   :  { %908 = vmatpush1.bf16.msra.mxu1 %v1263_v15  ;;  %868 = vmatprep.subr.bf16.mxu0 %v1264_v16  ;;  %v45_v42 = vunpack.c.0.s8 %v44_v37  ;;  %v1302_v46 = vld [vmem:[#allocation5 + $0x1d4] ss:$8 sps:$4 sm:$0xff]   ;;  %v1305_v48 = vld [vmem:[#allocation5 + $0x1d0] ss:$8 sps:$4 sm:$0xff]   ;;  %v1306_v50 = vld [vmem:[#allocation5 + $0xc4] ss:$8 sps:$4 sm:$0xff]  }
  0x2a   :  { %909 = vmatprep.subr.bf16.mxu1 %v1266_v17  ;;  %v1308_v51 = vld [vmem:[#allocation5 + $0x1c4] ss:$8 sps:$4 sm:$0xff]   ;;  %v1310_v53 = vld [vmem:[#allocation5 + $0xc0] ss:$8 sps:$4 sm:$0xff]   ;;  %v1312_v57 = vld [vmem:[#allocation5 + $0xb4] ss:$8 sps:$4 sm:$0xff]  }
  0x2b   :  { %v1543_v49 = vsub.s32 %v45_v42, %v47_v43  ;;  %v1311_v56 = vld [vmem:[#allocation5 + $0x1c0] ss:$8 sps:$4 sm:$0xff]   ;;  %v1314_v58 = vld [vmem:[#allocation5 + $0x1b4] ss:$8 sps:$4 sm:$0xff]   ;;  %v1316_v61 = vld [vmem:[#allocation5 + $0xb0] ss:$8 sps:$4 sm:$0xff]  }
  0x2c   :  { %869 = vmatpush1.bf16.msra.mxu0 %v1268_v18  ;;  %v1317_v0 = vld [vmem:[#allocation5 + $0x1b0] ss:$8 sps:$4 sm:$0xff]   ;;  %v1318_v1 = vld [vmem:[#allocation5 + $0xa4] ss:$8 sps:$4 sm:$0xff]   ;;  %v1322_v4 = vld [vmem:[#allocation5 + $0xa0] ss:$8 sps:$4 sm:$0xff]  }
  0x2d   :  { %910 = vmatpush1.bf16.msra.mxu1 %v1269_v19  ;;  %870 = vmatprep.subr.bf16.mxu0 %v1270_v20  ;;  %v49_v54 = vrot.slane %v38_v52, %v1543_v49  ;;  %v56_v60 = vrot.slane %v42_v55, %v1543_v49  ;;  %v1320_v2 = vld [vmem:[#allocation5 + $0x1a4] ss:$8 sps:$4 sm:$0xff]   ;;  %v1323_v5 = vld [vmem:[#allocation5 + $0x1a0] ss:$8 sps:$4 sm:$0xff]   ;;  %v1324_v6 = vld [vmem:[#allocation5 + $0x94] ss:$8 sps:$4 sm:$0xff]  }
  0x2e   :  { %911 = vmatprep.subr.bf16.mxu1 %v1272_v21  ;;  %v1326_v7 = vld [vmem:[#allocation5 + $0x194] ss:$8 sps:$4 sm:$0xff]   ;;  %v1328_v8 = vld [vmem:[#allocation5 + $0x90] ss:$8 sps:$4 sm:$0xff]   ;;  %v1330_v10 = vld [vmem:[#allocation5 + $0x84] ss:$8 sps:$4 sm:$0xff]  }
  0x2f   :  { %v57_v59 = vcombine.high %v49_v54, %v49_v54  ;;  %v58_v63 = vcombine.high %v56_v60, %v56_v60  ;;  %v1329_v9 = vld [vmem:[#allocation5 + $0x190] ss:$8 sps:$4 sm:$0xff]   ;;  %v1332_v11 = vld [vmem:[#allocation5 + $0x184] ss:$8 sps:$4 sm:$0xff]   ;;  %v1334_v12 = vld [vmem:[#allocation5 + $0x80] ss:$8 sps:$4 sm:$0xff]   ;;  %v84_v16 = vpack.c.bf16 %v49_v54, %v49_v54  ;;  %v86_v17 = vpack.c.bf16 %v56_v60, %v56_v60 }
  0x30   :  { %871 = vmatpush1.bf16.msra.mxu0 %v1274_v22  ;;  %v1335_v13 = vld [vmem:[#allocation5 + $0x180] ss:$8 sps:$4 sm:$0xff]   ;;  %v1339_v14 = vld [vmem:[#allocation5 + $0x274] ss:$8 sps:$4 sm:$0xff]   ;;  %v1337_v18 = vld [vmem:[#allocation5 + $0x270] ss:$8 sps:$4 sm:$0xff]  }
  0x31   :  { %912 = vmatpush1.bf16.msra.mxu1 %v1275_v23  ;;  %872 = vmatprep.subr.bf16.mxu0 %v1276_v24  ;;  %v85_v62 = vpack.c.bf16 %v57_v59, %v57_v59  ;;  %v87_v3 = vpack.c.bf16 %v58_v63, %v58_v63  ;;  %v1342_v15 = vld [vmem:[#allocation5 + $0x374] ss:$8 sps:$4 sm:$0xff]   ;;  %v1340_v19 = vld [vmem:[#allocation5 + $0x370] ss:$8 sps:$4 sm:$0xff]   ;;  %v1345_v20 = vld [vmem:[#allocation5 + $0x264] ss:$8 sps:$4 sm:$0xff]  }
  0x32   :  { %913 = vmatprep.subr.bf16.mxu1 %v1278_v25  ;;  %v1348_v21 = vld [vmem:[#allocation5 + $0x364] ss:$8 sps:$4 sm:$0xff]   ;;  %v1343_v22 = vld [vmem:[#allocation5 + $0x260] ss:$8 sps:$4 sm:$0xff]   ;;  %v1351_v24 = vld [vmem:[#allocation5 + $0x254] ss:$8 sps:$4 sm:$0xff]  }
  0x33   :  { %892 = vmatprep.mubr.bf16.mxu0 %v85_v62  ;;  %933 = vmatprep.mubr.bf16.mxu1 %v87_v3  ;;  %v1346_v23 = vld [vmem:[#allocation5 + $0x360] ss:$8 sps:$4 sm:$0xff]   ;;  %v1354_v25 = vld [vmem:[#allocation5 + $0x354] ss:$8 sps:$4 sm:$0xff]   ;;  %v1369_v36 = vld [vmem:[#allocation5 + $0x224] ss:$8 sps:$4 sm:$0xff]  }
  0x34   :  { %873 = vmatpush1.bf16.msra.mxu0 %v1280_v26  ;;  %v1349_v26 = vld [vmem:[#allocation5 + $0x250] ss:$8 sps:$4 sm:$0xff]   ;;  %v1372_v37 = vld [vmem:[#allocation5 + $0x324] ss:$8 sps:$4 sm:$0xff]   ;;  %v1367_v38 = vld [vmem:[#allocation5 + $0x220] ss:$8 sps:$4 sm:$0xff]  }
  0x35   :  { %914 = vmatpush1.bf16.msra.mxu1 %v1281_v27  ;;  %874 = vmatprep.subr.bf16.mxu0 %v1282_v28  ;;  %v1352_v27 = vld [vmem:[#allocation5 + $0x350] ss:$8 sps:$4 sm:$0xff]   ;;  %v1357_v28 = vld [vmem:[#allocation5 + $0x244] ss:$8 sps:$4 sm:$0xff]   ;;  %v1379_v54 = vld [vmem:[#allocation5 + $0x200] ss:$8 sps:$4 sm:$0xff]  }
  0x36   :  { %915 = vmatprep.subr.bf16.mxu1 %v1284_v29  ;;  %v1360_v29 = vld [vmem:[#allocation5 + $0x344] ss:$8 sps:$4 sm:$0xff]   ;;  %v39_v42 = vld [vmem:[#allocation2 + $0x8] sm:$0xff]  ;;  %v1382_v55 = vld [vmem:[#allocation5 + $0x300] ss:$8 sps:$4 sm:$0xff]   ;;  %vm1024_vm0 = vcmask 517120  }
  0x37   :  { %v1548_v43 = vrot.slane %v39_v42, %v1543_v49  ;;  %v1388_v59 = vld [vmem:[#allocation5 + $0x3f0] ss:$8 sps:$4 sm:$0xff]   ;;  %v1393_v60 = vld [vmem:[#allocation5 + $0x2e4] ss:$8 sps:$4 sm:$0xff]   ;;  %v1391_v62 = vld [vmem:[#allocation5 + $0x2e0] ss:$8 sps:$4 sm:$0xff]  }
  0x38   :  { %875 = vmatpush1.bf16.msra.mxu0 %v1286_v30  ;;  %v1355_v30 = vld [vmem:[#allocation5 + $0x240] ss:$8 sps:$4 sm:$0xff]   ;;  %v1400_v3 = vld [vmem:[#allocation5 + $0x3d0] ss:$8 sps:$4 sm:$0xff]   ;;  %vm1036_vm1 = vcmask 1041920   ;;  %vm1070_vm2 = vcmask 523264  }
  0x39   :  { %916 = vmatpush1.bf16.msra.mxu1 %v1287_v31  ;;  %876 = vmatprep.subr.bf16.mxu0 %v1288_v32  ;;  %v1358_v31 = vld [vmem:[#allocation5 + $0x340] ss:$8 sps:$4 sm:$0xff]   ;;  %v1363_v32 = vld [vmem:[#allocation5 + $0x234] ss:$8 sps:$4 sm:$0xff]   ;;  %s1521_s0 = smov [#allocation7]  }
  0x3a   :  { %917 = vmatprep.subr.bf16.mxu1 %v1290_v33  ;;  %v1366_v33 = vld [vmem:[#allocation5 + $0x334] ss:$8 sps:$4 sm:$0xff]   ;;  %v1394_v63 = vld [vmem:[#allocation5 + $0x3e0] ss:$8 sps:$4 sm:$0xff]   ;;  %s1091_s1 = sshll.u32 %s1521_s0, 4  ;;  %s1092_s1 = int_to_ptr.vmem [resolvable:$true] %s1091_s1 }
  0x3b   :  { %s1490_s21 = scalar_lea.vmem %s1092_s1, 64  ;;  %p1495_p11 = scmp.lt.s32.totalorder %s1092_s1, %s1092_s1 }
  0x3c   :  { %877 = vmatpush2.bf16.msra.mxu0 %v1292_v34  ;;  %v1361_v34 = vld [vmem:[#allocation5 + $0x230] ss:$8 sps:$4 sm:$0xff]   ;;  %p1491_p10 = scmp.ne.s32.totalorder %s1092_s1, %s1490_s21  ;;  %p1496_p12 = scmp.lt.s32.totalorder %s1490_s21, %s1490_s21 }
  0x3d   :  { %918 = vmatpush2.bf16.msra.mxu1 %v1293_v35  ;;  %878 = vmatprep.subr.bf16.mxu0 %v1294_v39  ;;  %v1364_v35 = vld [vmem:[#allocation5 + $0x330] ss:$8 sps:$4 sm:$0xff]   ;;  %v1370_v39 = vld [vmem:[#allocation5 + $0x320] ss:$8 sps:$4 sm:$0xff]  }
  0x3e   :  { %919 = vmatprep.subr.bf16.mxu1 %v1296_v40  ;;  %v1375_v40 = vld [vmem:[#allocation5 + $0x214] ss:$8 sps:$4 sm:$0xff]   ;;  %p1497_p13 = por %p1496_p12, %p1495_p11 }
  0x40   :  { %879 = vmatpush2.bf16.msra.mxu0 %v1298_v41  ;;  %v1378_v41 = vld [vmem:[#allocation5 + $0x314] ss:$8 sps:$4 sm:$0xff]   ;;  %p1498_p0 = pnand %p1497_p13, %p1491_p10 }
  0x41   :  { %920 = vmatpush2.bf16.msra.mxu1 %v1299_v44  ;;  %880 = vmatprep.subr.bf16.mxu0 %v1300_v45  ;;  %v59_v44 = vcombine.high %v39_v42, %v39_v42  ;;  %v1373_v45 = vld [vmem:[#allocation5 + $0x210] ss:$8 sps:$4 sm:$0xff]  }
  0x42   :  { %921 = vmatprep.subr.bf16.mxu1 %v1302_v46  ;;  %v1376_v46 = vld [vmem:[#allocation5 + $0x310] ss:$8 sps:$4 sm:$0xff]  }
  0x44   :  { %881 = vmatpush2.bf16.msra.mxu0 %v1304_v47  ;;  %v74_v47 = vcombine.high %v1548_v43, %v1548_v43 }
  0x45   :  { %922 = vmatpush2.bf16.msra.mxu1 %v1305_v48  ;;  %882 = vmatprep.subr.bf16.mxu0 %v1306_v50  ;;  %v1553_v48 = vrot.slane %v59_v44, %v1543_v49  ;;  %v1381_v50 = vld [vmem:[#allocation5 + $0x204] ss:$8 sps:$4 sm:$0xff]   ;;  %v1385_v49 = vld [vmem:[#allocation5 + $0x2f0] ss:$8 sps:$4 sm:$0xff]  }
  0x46   :  { %923 = vmatprep.subr.bf16.mxu1 %v1308_v51  ;;  %v1384_v51 = vld [vmem:[#allocation5 + $0x304] ss:$8 sps:$4 sm:$0xff]   ;;  %v89_v52 = vpack.c.bf16 %v74_v47, %v74_v47 }
  0x48   :  { %883 = vmatpush2.bf16.msra.mxu0 %v1310_v53  ;;  %v75_v53 = vcombine.high %v1553_v48, %v1553_v48 }
  0x49   :  { %924 = vmatpush2.bf16.msra.mxu1 %v1311_v56  ;;  %884 = vmatprep.subr.bf16.mxu0 %v1312_v57  ;;  %v1387_v57 = vld [vmem:[#allocation5 + $0x2f4] ss:$8 sps:$4 sm:$0xff]  }
  0x4a   :  { %925 = vmatprep.subr.bf16.mxu1 %v1314_v58  ;;  %v91_v56 = vpack.c.bf16 %v75_v53, %v75_v53  ;;  %v1390_v58 = vld [vmem:[#allocation5 + $0x3f4] ss:$8 sps:$4 sm:$0xff]  }
  0x4c   :  { %885 = vmatpush2.bf16.msra.mxu0 %v1316_v61  ;;  %v1396_v61 = vld [vmem:[#allocation5 + $0x3e4] ss:$8 sps:$4 sm:$0xff]  }
  0x4d   :  { %926 = vmatpush2.bf16.msra.mxu1 %v1317_v0  ;;  %886 = vmatprep.subr.bf16.mxu0 %v1318_v1  ;;  %v1399_v0 = vld [vmem:[#allocation5 + $0x2d4] ss:$8 sps:$4 sm:$0xff]  }
  0x4e   :  { %927 = vmatprep.subr.bf16.mxu1 %v1320_v2  ;;  %v1402_v1 = vld [vmem:[#allocation5 + $0x3d4] ss:$8 sps:$4 sm:$0xff]   ;;  %v1397_v2 = vld [vmem:[#allocation5 + $0x2d0] ss:$8 sps:$4 sm:$0xff]  }
  0x50   :  { %887 = vmatpush2.bf16.msra.mxu0 %v1322_v4  ;;  %v1405_v4 = vld [vmem:[#allocation5 + $0x2c4] ss:$8 sps:$4 sm:$0xff]  }
  0x51   :  { %928 = vmatpush2.bf16.msra.mxu1 %v1323_v5  ;;  %888 = vmatprep.subr.bf16.mxu0 %v1324_v6  ;;  %v1408_v5 = vld [vmem:[#allocation5 + $0x3c4] ss:$8 sps:$4 sm:$0xff]   ;;  %v1403_v6 = vld [vmem:[#allocation5 + $0x2c0] ss:$8 sps:$4 sm:$0xff]  }
  0x52   :  { %929 = vmatprep.subr.bf16.mxu1 %v1326_v7  ;;  %v1406_v7 = vld [vmem:[#allocation5 + $0x3c0] ss:$8 sps:$4 sm:$0xff]  }
  0x54   :  { %889 = vmatpush2.bf16.msra.mxu0 %v1328_v8  ;;  %v1411_v8 = vld [vmem:[#allocation5 + $0x2b4] ss:$8 sps:$4 sm:$0xff]  }
  0x55   :  { %930 = vmatpush2.bf16.msra.mxu1 %v1329_v9  ;;  %890 = vmatprep.subr.bf16.mxu0 %v1330_v10  ;;  %v1414_v9 = vld [vmem:[#allocation5 + $0x3b4] ss:$8 sps:$4 sm:$0xff]   ;;  %v1409_v10 = vld [vmem:[#allocation5 + $0x2b0] ss:$8 sps:$4 sm:$0xff]  }
  0x56   :  { %931 = vmatprep.subr.bf16.mxu1 %v1332_v11  ;;  %v1412_v11 = vld [vmem:[#allocation5 + $0x3b0] ss:$8 sps:$4 sm:$0xff]  }
  0x58   :  { %891 = vmatpush2.bf16.msra.mxu0 %v1334_v12  ;;  %v1417_v12 = vld [vmem:[#allocation5 + $0x2a4] ss:$8 sps:$4 sm:$0xff]  }
  0x59   :  { %932 = vmatpush2.bf16.msra.mxu1 %v1335_v13  ;;  %942 = vmatprep.subr.bf16.mxu0 %v1339_v14  ;;  %v1420_v13 = vld [vmem:[#allocation5 + $0x3a4] ss:$8 sps:$4 sm:$0xff]   ;;  %v1415_v14 = vld [vmem:[#allocation5 + $0x2a0] ss:$8 sps:$4 sm:$0xff]  }
  0x5a   :  { %983 = vmatprep.subr.bf16.mxu1 %v1342_v15  ;;  %v1418_v15 = vld [vmem:[#allocation5 + $0x3a0] ss:$8 sps:$4 sm:$0xff]  }
  0x5b   :  { %893 = vmatmul.mubr.bf16.vlgmr.msra.gmra.mxu0 %v84_v16  ;;  %v1423_v16 = vld [vmem:[#allocation5 + $0x294] ss:$8 sps:$4 sm:$0xff]  }
  0x5c   :  { %934 = vmatmul.mubr.bf16.vlgmr.msra.gmra.mxu1 %v86_v17  ;;  %943 = vmatpush1.bf16.msra.mxu0 %v1337_v18  ;;  %v1426_v17 = vld [vmem:[#allocation5 + $0x394] ss:$8 sps:$4 sm:$0xff]   ;;  %v1421_v18 = vld [vmem:[#allocation5 + $0x290] ss:$8 sps:$4 sm:$0xff]  }
  0x5d   :  { %984 = vmatpush1.bf16.msra.mxu1 %v1340_v19  ;;  %944 = vmatprep.subr.bf16.mxu0 %v1345_v20  ;;  %v1424_v19 = vld [vmem:[#allocation5 + $0x390] ss:$8 sps:$4 sm:$0xff]   ;;  %v1429_v20 = vld [vmem:[#allocation5 + $0x284] ss:$8 sps:$4 sm:$0xff]  }
  0x5e   :  { %985 = vmatprep.subr.bf16.mxu1 %v1348_v21  ;;  %974 = vmatprep.mubr.bf16.mxu0 %v89_v52  ;;  %v1432_v21 = vld [vmem:[#allocation5 + $0x384] ss:$8 sps:$4 sm:$0xff]  }
  0x5f   :  { %1015 = vmatprep.mubr.bf16.mxu1 %v91_v56 }
  0x60   :  { %945 = vmatpush1.bf16.msra.mxu0 %v1343_v22  ;;  %v1427_v22 = vld [vmem:[#allocation5 + $0x280] ss:$8 sps:$4 sm:$0xff]  }
  0x61   :  { %986 = vmatpush1.bf16.msra.mxu1 %v1346_v23  ;;  %946 = vmatprep.subr.bf16.mxu0 %v1351_v24  ;;  %v1430_v23 = vld [vmem:[#allocation5 + $0x380] ss:$8 sps:$4 sm:$0xff]   ;;  %v88_v24 = vpack.c.bf16 %v1548_v43, %v1548_v43 }
  0x62   :  { %987 = vmatprep.subr.bf16.mxu1 %v1354_v25  ;;  %v90_v25 = vpack.c.bf16 %v1553_v48, %v1553_v48 }
  0x64   :  { %947 = vmatpush1.bf16.msra.mxu0 %v1349_v26 }
  0x65   :  { %988 = vmatpush1.bf16.msra.mxu1 %v1352_v27  ;;  %948 = vmatprep.subr.bf16.mxu0 %v1357_v28 }
  0x66   :  { %989 = vmatprep.subr.bf16.mxu1 %v1360_v29 }
  0x68   :  { %949 = vmatpush1.bf16.msra.mxu0 %v1355_v30 }
  0x69   :  { %990 = vmatpush1.bf16.msra.mxu1 %v1358_v31  ;;  %950 = vmatprep.subr.bf16.mxu0 %v1363_v32 }
  0x6a   :  { %991 = vmatprep.subr.bf16.mxu1 %v1366_v33 }
  0x6c   :  { %951 = vmatpush1.bf16.msra.mxu0 %v1361_v34 }
  0x6d   :  { %992 = vmatpush1.bf16.msra.mxu1 %v1364_v35  ;;  %952 = vmatprep.subr.bf16.mxu0 %v1369_v36 }
  0x6e   :  { %993 = vmatprep.subr.bf16.mxu1 %v1372_v37 }
  0x70   :  { %953 = vmatpush1.bf16.msra.mxu0 %v1367_v38 }
  0x71   :  { %994 = vmatpush1.bf16.msra.mxu1 %v1370_v39  ;;  %954 = vmatprep.subr.bf16.mxu0 %v1375_v40 }
  0x72   :  { %995 = vmatprep.subr.bf16.mxu1 %v1378_v41 }
  0x74   :  { %955 = vmatpush1.bf16.msra.mxu0 %v1373_v45 }
  0x75   :  { %996 = vmatpush1.bf16.msra.mxu1 %v1376_v46  ;;  %956 = vmatprep.subr.bf16.mxu0 %v1381_v50 }
  0x76   :  { %997 = vmatprep.subr.bf16.mxu1 %v1384_v51 }
  0x78   :  { %957 = vmatpush1.bf16.msra.mxu0 %v1379_v54 }
  0x79   :  { %998 = vmatpush1.bf16.msra.mxu1 %v1382_v55  ;;  %958 = vmatprep.subr.bf16.mxu0 %v1387_v57 }
  0x7a   :  { %999 = vmatprep.subr.bf16.mxu1 %v1390_v58 }
  0x7c   :  { %959 = vmatpush2.bf16.msra.mxu0 %v1385_v49 }
  0x7d   :  { %1000 = vmatpush2.bf16.msra.mxu1 %v1388_v59  ;;  %960 = vmatprep.subr.bf16.mxu0 %v1393_v60 }
  0x7e   :  { %1001 = vmatprep.subr.bf16.mxu1 %v1396_v61 }
  0x80   :  { %961 = vmatpush2.bf16.msra.mxu0 %v1391_v62 }
  0x81   :  { %1002 = vmatpush2.bf16.msra.mxu1 %v1394_v63  ;;  %962 = vmatprep.subr.bf16.mxu0 %v1399_v0 }
  0x82   :  { %1003 = vmatprep.subr.bf16.mxu1 %v1402_v1 }
  0x84   :  { %963 = vmatpush2.bf16.msra.mxu0 %v1397_v2 }
  0x85   :  { %1004 = vmatpush2.bf16.msra.mxu1 %v1400_v3  ;;  %964 = vmatprep.subr.bf16.mxu0 %v1405_v4 }
  0x86   :  { %1005 = vmatprep.subr.bf16.mxu1 %v1408_v5 }
  0x88   :  { %965 = vmatpush2.bf16.msra.mxu0 %v1403_v6 }
  0x89   :  { %1006 = vmatpush2.bf16.msra.mxu1 %v1406_v7  ;;  %966 = vmatprep.subr.bf16.mxu0 %v1411_v8 }
  0x8a   :  { %1007 = vmatprep.subr.bf16.mxu1 %v1414_v9 }
  0x8c   :  { %967 = vmatpush2.bf16.msra.mxu0 %v1409_v10 }
  0x8d   :  { %1008 = vmatpush2.bf16.msra.mxu1 %v1412_v11  ;;  %968 = vmatprep.subr.bf16.mxu0 %v1417_v12 }
  0x8e   :  { %1009 = vmatprep.subr.bf16.mxu1 %v1420_v13 }
  0x90   :  { %969 = vmatpush2.bf16.msra.mxu0 %v1415_v14 }
  0x91   :  { %1010 = vmatpush2.bf16.msra.mxu1 %v1418_v15  ;;  %970 = vmatprep.subr.bf16.mxu0 %v1423_v16 }
  0x92   :  { %1011 = vmatprep.subr.bf16.mxu1 %v1426_v17 }
  0x94   :  { %971 = vmatpush2.bf16.msra.mxu0 %v1421_v18 }
  0x95   :  { %1012 = vmatpush2.bf16.msra.mxu1 %v1424_v19  ;;  %972 = vmatprep.subr.bf16.mxu0 %v1429_v20 }
  0x96   :  { %1013 = vmatprep.subr.bf16.mxu1 %v1432_v21 }
  0x98   :  { %973 = vmatpush2.bf16.msra.mxu0 %v1427_v22 }
  0x99   :  { %1014 = vmatpush2.bf16.msra.mxu1 %v1430_v23 }
  0x9b   :  { %975 = vmatmul.mubr.bf16.vlgmr.msra.gmra.mxu0 %v88_v24 }
  0x9c   :  { %1016 = vmatmul.mubr.bf16.vlgmr.msra.gmra.mxu1 %v90_v25 }
 0x11b   :  { %v894_v26 = vpop.f32.mrf.mxu0 }
 0x11c   :  { %v935_v27 = vpop.f32.mrf.mxu1 }
 0x11d   :  { %v896_v28 = vpop.f32.mrf.mxu0  ;;  %v936_v34 = vadd.f32 %v935_v27, %v894_v26 }
 0x11e   :  { %v937_v29 = vpop.f32.mrf.mxu1 }
 0x11f   :  { %v898_v30 = vpop.f32.mrf.mxu0  ;;  %v938_v37 = vadd.f32 %v937_v29, %v896_v28 }
 0x120   :  { %v939_v31 = vpop.f32.mrf.mxu1 }
 0x121   :  { %v899_v32 = vpop.f32.mrf.mxu0 }
 0x122   :  { %v940_v33 = vpop.f32.mrf.mxu1 }
 0x15b   :  { %v976_v35 = vpop.f32.mrf.mxu0 }
 0x15c   :  { %v1017_v36 = vpop.f32.mrf.mxu1  ;;  %v977_v38 = vadd.f32 %v976_v35, %v936_v34 }
 0x15d   :  { %v978_v39 = vpop.f32.mrf.mxu0 }
 0x15e   :  { %v1019_v40 = vpop.f32.mrf.mxu1  ;;  %v1018_v41 = vadd.f32 %v1017_v36, %v977_v38  ;;  %v979_v42 = vadd.f32 %v978_v39, %v938_v37 }
 0x15f   :  { %v980_v43 = vpop.f32.mrf.mxu0 }
 0x160   :  { %v1021_v44 = vpop.f32.mrf.mxu1  ;;  %v1020_v45 = vadd.f32 %v1019_v40, %v979_v42  ;;  %v1025_v46 = vsel %vm1024_vm0, %v1018_v41, -inf  ;;  %v1037_v51 = vsel %vm1036_vm1, %v1018_v41, -inf }
 0x161   :  { %v981_v47 = vpop.f32.mrf.mxu0  ;;  %1026 = vmax.xlane.f32.xlu0 %v1025_v46 }
 0x162   :  { %v1022_v48 = vpop.f32.mrf.mxu1  ;;  %v1048_v50 = vsel %vm1024_vm0, %v1020_v45, -inf  ;;  %v1059_v52 = vsel %vm1036_vm1, %v1020_v45, -inf }
 0x163   :  { %1049 = vmax.xlane.f32.xlu1 %v1048_v50 }
 0x165   :  { %1038 = vmax.xlane.f32.xlu0 %v1037_v51 }
 0x167   :  { %1060 = vmax.xlane.f32.xlu1 %v1059_v52 }
 0x1ea   :  { %v1027_v53 = vpop.xlane.xlu0 %1026 }
 0x1eb   :  { %v1028_v54 = vmul.f32 0.5, %v1027_v53 }
 0x1ec   :  { %v1050_v55 = vpop.xlane.xlu1 %1049 }
 0x1ed   :  { %v1029_v56 = vsub.f32 %v1018_v41, %v1028_v54  ;;  %v1051_v57 = vmul.f32 0.5, %v1050_v55 }
 0x1ee   :  { %v1039_v58 = vpop.xlane.xlu0 %1038 }
 0x1ef   :  { %v1229_v49 = vmul.f32 -1.442695, %v1029_v56  ;;  %v1052_v59 = vsub.f32 %v1020_v45, %v1051_v57  ;;  %v1040_v60 = vmul.f32 0.5, %v1039_v58 }
 0x1f0   :  { %v1061_v61 = vpop.xlane.xlu1 %1060 }
 0x1f1   :  { %1434 = vpow2.f32 %v1229_v49  ;;  %v1231_v62 = vmul.f32 -1.442695, %v1052_v59  ;;  %v1041_v63 = vsub.f32 %v1018_v41, %v1040_v60  ;;  %v1062_v0 = vmul.f32 0.5, %v1061_v61 }
 0x1f3   :  { %1436 = vpow2.f32 %v1231_v62  ;;  %v1230_v1 = vmul.f32 -1.442695, %v1041_v63  ;;  %v1063_v2 = vsub.f32 %v1020_v45, %v1062_v0 }
 0x1f5   :  { %1438 = vpow2.f32 %v1230_v1  ;;  %v1232_v3 = vmul.f32 -1.442695, %v1063_v2 }
 0x1f7   :  { %1440 = vpow2.f32 %v1232_v3 }
 0x1fe   :  { %v1435_v4 = vpop.eup %1434 }
 0x1ff   :  { %v1033_v6 = vadd.f32 1.0, %v1435_v4 }
 0x200   :  { %v1437_v5 = vpop.eup %1436 }
 0x201   :  { %v1056_v8 = vadd.f32 1.0, %v1437_v5  ;;  %1442 = vrcp.f32 %v1033_v6 }
 0x202   :  { %v1439_v7 = vpop.eup %1438 }
 0x203   :  { %v1045_v9 = vadd.f32 1.0, %v1439_v7 }
 0x204   :  { %v1441_v10 = vpop.eup %1440 }
 0x205   :  { %1444 = vrcp.f32 %v1045_v9  ;;  %v1067_v11 = vadd.f32 1.0, %v1441_v10 }
 0x206   :  { %1446 = vrcp.f32 %v1056_v8 }
 0x207   :  { %1448 = vrcp.f32 %v1067_v11 }
 0x20e   :  { %v1443_v12 = vpop.eup %1442 }
 0x212   :  { %v1445_v13 = vpop.eup %1444 }
 0x213   :  { %v1447_v14 = vpop.eup %1446  ;;  %v1071_v16 = vsel %vm1070_vm2, %v1443_v12, %v1445_v13 }
 0x214   :  { %v1449_v15 = vpop.eup %1448 }
 0x215   :  { %v1072_v17 = vsel %vm1070_vm2, %v1447_v14, %v1449_v15 }
 0x216   :  { %v1075_v18 = vcombine.low %v1071_v16, %v1072_v17 }
 0x218   :  { %1233 = vst.sshfl [vmem:[#allocation7] sm:$0x33 pattern:$0x76325410] %v1075_v18 }
 0x219   :  { %1501 = shalt.err (!%p1498_p0)
}
 0x21a   :  { %1094 = dma.vmem_to_hbm [thread:$0]  %s1092_s1, 64, %s1566_s2, [#allocation4]  }
 0x21b   :  { %1514 = dma.done.wait [#allocation4], 64  }
 0x21c   :  { %1515 = vsyncadd [#allocation4], 4294967232 }
 0x21d   :  { %1098 = vsyncpa [#allocation3], 1 }
 0x21e   :  { %1099 = vsyncpa [#allocation6], 1 }
 0x21f   :  { %1100 = vsyncpa [#allocation4], 1 }

</bundles_post_ra>
